<compile_context>
chip_gen: v5e
topology: v5e:2x2
jax: 0.10.0
libtpu: 0.0.40
codegen_flags: <defaults>
</compile_context>

<pallas_src>
import jax
import jax.numpy as jnp
from jax.experimental import pallas as pl
from jax.experimental.pallas import tpu as pltpu


def _round_up(n, m):
    return ((n + m - 1) // m) * m


# -------------------------------------------------------------------------
# Kernel A — fused "slab" (H < 128, e.g. default H=64 -> 2H=128):
#   h1  = tanh(x  @ W1 + b1)            # fused actor|critic layer 1, [tb, 2H]
#   h2  = tanh(h1 @ W2 + b2)            # fused block-diagonal layer 2, [tb, 2H]
#   val = sum(h2 * wcl_pad, -1) + bcl   # VPU mul + XLU lane reduce
#   out[:, :H] = h2[:, :H] (actor), out[:, H:] = val (broadcast)
# -------------------------------------------------------------------------
def _mlp_base_slab_kernel(x_ref, w1_ref, b1_ref, w2_ref, b2_ref, wcl_ref,
                          amask_ref, bcl_ref, out_ref):
    x = x_ref[...]                                       # [tb, num_inputs]
    h1 = jnp.tanh(
        jnp.dot(x, w1_ref[...], preferred_element_type=jnp.float32)
        + b1_ref[...])
    h2 = jnp.tanh(
        jnp.dot(h1.astype(w2_ref.dtype), w2_ref[...],
                preferred_element_type=jnp.float32)
        + b2_ref[...])
    # Value head: wcl is zero over the actor half, so only the critic half
    # contributes.  No MXU drain for a 1-wide result, no [1,H] transpose.
    val = jnp.sum(h2 * wcl_ref[...], axis=-1, keepdims=True) + bcl_ref[0, 0]
    # Lane-dense output slab (unmasked vst): actor half | broadcast value.
    out_ref[...] = jnp.where(amask_ref[...] > 0.5, h2, val)


# -------------------------------------------------------------------------
# Kernel B — split outputs (H >= 128): separate actor / value writes and
# per-branch layer-2 matmuls (no block-diag W2, no 2x write amplification).
# -------------------------------------------------------------------------
def _mlp_base_split_kernel(x_ref, w1_ref, b1_ref, w2a_ref, b2a_ref,
                           w2c_ref, b2c_ref, wcl_ref, bcl_ref,
                           actor_ref, value_ref):
    H = actor_ref.shape[1]
    x = x_ref[...]
    h1 = jnp.tanh(
        jnp.dot(x, w1_ref[...], preferred_element_type=jnp.float32)
        + b1_ref[...])
    h1 = h1.astype(w2a_ref.dtype)
    ha = jnp.tanh(
        jnp.dot(h1[:, :H], w2a_ref[...], preferred_element_type=jnp.float32)
        + b2a_ref[...])
    hc = jnp.tanh(
        jnp.dot(h1[:, H:], w2c_ref[...], preferred_element_type=jnp.float32)
        + b2c_ref[...])
    actor_ref[...] = ha.astype(actor_ref.dtype)
    val = jnp.sum(hc * wcl_ref[...], axis=-1, keepdims=True) + bcl_ref[0, 0]
    # TODO(synk): could emit value batch-on-lanes ([1, tb] via XLU transpose) to
    # avoid 1-lane masked stores; the [B,1] write is bandwidth-negligible anyway.
    value_ref[...] = val.astype(value_ref.dtype)


def _weight_spec(shape, buffering):
    """VMEM-resident operand (constant index_map), optionally single-buffered."""
    if buffering is None:
        return pl.BlockSpec(shape, lambda i: (0, 0))
    return pl.BlockSpec(shape, lambda i: (0, 0), pipeline_mode=buffering)


# -------------------------------------------------------------------------
# Host-side parameter fusion (do once)
# -------------------------------------------------------------------------
def fuse_params(params, compute_dtype=jnp.float32):
    """Pre-transpose + fuse PyTorch-convention params into kernel layout.

    compute_dtype=jnp.bfloat16 halves the x read and weight footprint on
    v6e/v7x (f32 accumulation / tanh / outputs are preserved)."""
    H = params["w2a"].shape[0]
    cdt = jnp.dtype(compute_dtype)
    w1 = jnp.concatenate([params["w1a"].T, params["w1c"].T], axis=1).astype(cdt)
    b1 = jnp.concatenate([params["b1a"], params["b1c"]], axis=1).astype(jnp.float32)
    bcl = params["bcl"].reshape(1, 1).astype(jnp.float32)
    fused = {"hidden_size": H, "compute_dtype": cdt, "w1": w1, "b1": b1, "bcl": bcl}
    if H < 128:
        # Small H: one lane-dense [B, 2H] output slab, block-diagonal layer 2.
        w2 = jnp.zeros((2 * H, 2 * H), jnp.float32)
        w2 = w2.at[:H, :H].set(params["w2a"].T).at[H:, H:].set(params["w2c"].T)
        fused["w2"] = w2.astype(cdt)
        fused["b2"] = jnp.concatenate([params["b2a"], params["b2c"]],
                                      axis=1).astype(jnp.float32)
        fused["wcl"] = jnp.concatenate(
            [jnp.zeros((1, H), jnp.float32), params["wcl"].astype(jnp.float32)],
            axis=1)
        # Explicit actor-column mask (reusing wcl's zero pattern is NOT safe).
        fused["actor_mask"] = jnp.concatenate(
            [jnp.ones((1, H), jnp.float32), jnp.zeros((1, H), jnp.float32)], axis=1)
    else:
        # Large H: separate actor/value outputs, per-branch layer-2 weights.
        fused["w2a"] = params["w2a"].T.astype(cdt)
        fused["w2c"] = params["w2c"].T.astype(cdt)
        fused["b2a"] = params["b2a"].astype(jnp.float32)
        fused["b2c"] = params["b2c"].astype(jnp.float32)
        fused["wcl"] = params["wcl"].astype(jnp.float32)
    return fused


# -------------------------------------------------------------------------
# Host-side wrapper
# -------------------------------------------------------------------------
def mlp_base_forward(x, rnn_hxs, masks, fused, *, block_b=4096):
    """Pallas-backed MLPBase.forward (non-recurrent).

    Returns (value [B, 1], hidden_actor [B, H], rnn_hxs)."""
    del masks  # only used by the (unimplemented) recurrent path
    B, num_inputs = x.shape
    H = fused["hidden_size"]
    two_h = 2 * H
    cdt = fused["compute_dtype"]
    x = x.astype(cdt)
    isz = jnp.dtype(cdt).itemsize

    # Batch tile: big enough to amortize the ~0.35 us per-grid-step overhead
    # (sweep block_b: ~2048 on v5e, 4096 default, up to 8192 on v7x), but
    # capped at ceil(B/2) so the "parallel" batch axis keeps >= 2 grid steps
    # when B allows (v7x megacore).  No host padding: Pallas masks the ragged
    # last block's writes.
    tb = max(8, min(block_b, _round_up(pl.cdiv(B, 2), 8)))
    grid = (pl.cdiv(B, tb),)

    if "w2" in fused:   # ---------------- fused-slab path (H < 128) ----------
        est = (2 * tb * num_inputs * isz              # x (double-buffered)
               + 2 * tb * two_h * 4                   # out slab (double-buffered)
               + (num_inputs + two_h) * two_h * isz   # W1 + block-diag W2
               + 8 * two_h * 4                        # b1/b2/wcl/mask rows
               + 3 * tb * two_h * 4)                  # h1/h2/select temps (f32)
        vmem_limit = int(min(64 << 20, max(32 << 20, 2 * est)))

        def build(buffering):
            return pl.pallas_call(
                _mlp_base_slab_kernel,
                out_shape=jax.ShapeDtypeStruct((B, two_h), jnp.float32),
                grid=grid,
                in_specs=[
                    pl.BlockSpec((tb, num_inputs), lambda i: (i, 0)),   # x (batch-tiled)
                    _weight_spec((num_inputs, two_h), buffering),       # fused W1
                    _weight_spec((1, two_h), buffering),                # fused b1
                    _weight_spec((two_h, two_h), buffering),            # block-diag W2
                    _weight_spec((1, two_h), buffering),                # fused b2
                    _weight_spec((1, two_h), buffering),                # zero-padded wcl
                    _weight_spec((1, two_h), buffering),                # actor-column mask
                    pl.BlockSpec(memory_space=pltpu.MemorySpace.SMEM),  # bcl scalar
                ],
                out_specs=pl.BlockSpec((tb, two_h), lambda i: (i, 0)),
                compiler_params=pltpu.CompilerParams(
                    dimension_semantics=("parallel",),
                    vmem_limit_bytes=vmem_limit),
            )

        args = (x, fused["w1"], fused["b1"], fused["w2"], fused["b2"],
                fused["wcl"], fused["actor_mask"], fused["bcl"])
        try:
            out = build(pl.Buffered(1))(*args)   # single-buffer resident weights
        except Exception:                        # fallback: default buffering
            out = build(None)(*args)
        hidden_actor = out[:, :H]
        value = out[:, H:H + 1]

    else:               # ---------------- split path (H >= 128) --------------
        est = (2 * tb * num_inputs * isz                  # x (double-buffered)
               + 2 * tb * H * 4 + 2 * tb * 4              # actor + value outs
               + (num_inputs * two_h + 2 * H * H) * isz   # W1, W2a, W2c
               + 8 * H * 4                                # bias / wcl rows
               + (tb * two_h + 3 * tb * H) * 4)           # h1/ha/hc temps (f32)
        vmem_limit = int(min(64 << 20, max(32 << 20, 2 * est)))

        def build(buffering):
            return pl.pallas_call(
                _mlp_base_split_kernel,
                out_shape=(jax.ShapeDtypeStruct((B, H), jnp.float32),
                           jax.ShapeDtypeStruct((B, 1), jnp.float32)),
                grid=grid,
                in_specs=[
                    pl.BlockSpec((tb, num_inputs), lambda i: (i, 0)),   # x (batch-tiled)
                    _weight_spec((num_inputs, two_h), buffering),       # fused W1
                    _weight_spec((1, two_h), buffering),                # fused b1
                    _weight_spec((H, H), buffering),                    # W2 actor
                    _weight_spec((1, H), buffering),                    # b2 actor
                    _weight_spec((H, H), buffering),                    # W2 critic
                    _weight_spec((1, H), buffering),                    # b2 critic
                    _weight_spec((1, H), buffering),                    # wcl
                    pl.BlockSpec(memory_space=pltpu.MemorySpace.SMEM),  # bcl scalar
                ],
                out_specs=[pl.BlockSpec((tb, H), lambda i: (i, 0)),
                           pl.BlockSpec((tb, 1), lambda i: (i, 0))],
                compiler_params=pltpu.CompilerParams(
                    dimension_semantics=("parallel",),
                    vmem_limit_bytes=vmem_limit),
            )

        args = (x, fused["w1"], fused["b1"], fused["w2a"], fused["b2a"],
                fused["w2c"], fused["b2c"], fused["wcl"], fused["bcl"])
        try:
            hidden_actor, value = build(pl.Buffered(1))(*args)
        except Exception:
            hidden_actor, value = build(None)(*args)

    return value, hidden_actor, rnn_hxs


# -------------------------------------------------------------------------
# Deterministic parameter init (mirrors MLPBase: orthogonal_ weights with gain
# sqrt(2), zero biases).  PyTorch weight convention: [out_features, in_features].
# -------------------------------------------------------------------------
def _orthogonal(key, shape, gain):
    rows, cols = shape
    n = max(rows, cols)
    a = jax.random.normal(key, (n, min(rows, cols)), dtype=jnp.float32)
    q, r = jnp.linalg.qr(a)
    q = q * jnp.sign(jnp.diag(r))[None, :]   # sign fix for determinism
    w = q if rows >= cols else q.T
    w = w[:rows, :cols]
    return (gain * w).astype(jnp.float32)


def make_params(key, num_inputs, hidden_size):
    gain = jnp.sqrt(2.0).astype(jnp.float32)
    ks = jax.random.split(key, 5)
    return {
        "w1a": _orthogonal(ks[0], (hidden_size, num_inputs), gain),
        "b1a": jnp.zeros((1, hidden_size), jnp.float32),
        "w2a": _orthogonal(ks[1], (hidden_size, hidden_size), gain),
        "b2a": jnp.zeros((1, hidden_size), jnp.float32),
        "w1c": _orthogonal(ks[2], (hidden_size, num_inputs), gain),
        "b1c": jnp.zeros((1, hidden_size), jnp.float32),
        "w2c": _orthogonal(ks[3], (hidden_size, hidden_size), gain),
        "b2c": jnp.zeros((1, hidden_size), jnp.float32),
        "wcl": _orthogonal(ks[4], (1, hidden_size), gain),
        "bcl": jnp.zeros((1, 1), jnp.float32),
    }


def _reference_forward(x, params):
    ha = jnp.tanh(x @ params["w1a"].T + params["b1a"])
    ha = jnp.tanh(ha @ params["w2a"].T + params["b2a"])
    hc = jnp.tanh(x @ params["w1c"].T + params["b1c"])
    hc = jnp.tanh(hc @ params["w2c"].T + params["b2c"])
    val = hc @ params["wcl"].T + params["bcl"]
    return val, ha


if __name__ == "__main__":
    key = jax.random.PRNGKey(0)
    k_x, k_h, k_p, k_x2, k_p2 = jax.random.split(key, 5)

    # --- 1) Default MLPBase config (H=64): fused lane-dense slab kernel ------
    batch, num_inputs, hidden = 4, 32, 64
    x = jax.random.normal(k_x, (batch, num_inputs), dtype=jnp.float32)
    rnn_hxs = jax.random.normal(k_h, (batch, 1), dtype=jnp.float32)  # size 1 when not recurrent
    masks = jnp.ones((batch, 1), dtype=jnp.float32)

    params = make_params(k_p, num_inputs, hidden)
    fused = fuse_params(params)
    value, hidden_actor, rnn_out = mlp_base_forward(x, rnn_hxs, masks, fused)
    jax.block_until_ready((value, hidden_actor, rnn_out))

    ref_val, ref_actor = _reference_forward(x, params)
    assert value.shape == (batch, 1)
    assert hidden_actor.shape == (batch, hidden)
    assert jnp.allclose(value, ref_val, atol=1e-5)
    assert jnp.allclose(hidden_actor, ref_actor, atol=1e-5)
    assert jnp.array_equal(rnn_out, rnn_hxs)

    # --- 2) Larger-H config (H=128): split kernel, ragged (B=10) last block --
    batch2, num_inputs2, hidden2 = 10, 16, 128
    x2 = jax.random.normal(k_x2, (batch2, num_inputs2), dtype=jnp.float32)
    params2 = make_params(k_p2, num_inputs2, hidden2)
    fused2 = fuse_params(params2)
    v2, a2, _ = mlp_base_forward(
        x2, jnp.zeros((batch2, 1), jnp.float32), jnp.ones((batch2, 1), jnp.float32),
        fused2)
    jax.block_until_ready((v2, a2))
    rv2, ra2 = _reference_forward(x2, params2)
    assert v2.shape == (batch2, 1) and a2.shape == (batch2, hidden2)
    assert jnp.allclose(v2, rv2, atol=1e-4)
    assert jnp.allclose(a2, ra2, atol=1e-4)

    # --- 3) bf16 compute-dtype option (v6e/v7x bandwidth path), f32 accum ----
    fused_bf16 = fuse_params(params, compute_dtype=jnp.bfloat16)
    v_b, a_b, _ = mlp_base_forward(x, rnn_hxs, masks, fused_bf16)
    jax.block_until_ready((v_b, a_b))
    assert v_b.dtype == jnp.float32 and a_b.dtype == jnp.float32
    assert jnp.allclose(v_b, ref_val, atol=1e-1)
    assert jnp.allclose(a_b, ref_actor, atol=1e-1)

    print("KERNEL_OK")
</pallas_src>

<mosaic_0001>
module attributes {stable_mosaic.version = 11 : i64} {
  func.func @_mlp_base_slab_kernel(%arg0: i32, %arg1: memref<8x32xf32, #tpu.memory_space<vmem>>, %arg2: memref<32x128xf32, #tpu.memory_space<vmem>>, %arg3: memref<1x128xf32, #tpu.memory_space<vmem>>, %arg4: memref<128x128xf32, #tpu.memory_space<vmem>>, %arg5: memref<1x128xf32, #tpu.memory_space<vmem>>, %arg6: memref<1x128xf32, #tpu.memory_space<vmem>>, %arg7: memref<1x128xf32, #tpu.memory_space<vmem>>, %arg8: memref<1x1xf32, #tpu.memory_space<smem>>, %arg9: memref<8x128xf32, #tpu.memory_space<vmem>>) attributes {dimension_semantics = [#tpu.dimension_semantics<parallel>], iteration_bounds = array<i64: 1>, scalar_prefetch = 0 : i64, scratch_operands = 0 : i64, tpu.core_type = #tpu.core_type<tc>, window_params = [{transform_indices = @transform_0, window_bounds = array<i64: 8, 32>}, {pipeline_mode = #tpu.pipeline_mode<synchronous>, transform_indices = @transform_1, window_bounds = array<i64: 32, 128>}, {pipeline_mode = #tpu.pipeline_mode<synchronous>, transform_indices = @transform_2, window_bounds = array<i64: 1, 128>}, {pipeline_mode = #tpu.pipeline_mode<synchronous>, transform_indices = @transform_3, window_bounds = array<i64: 128, 128>}, {pipeline_mode = #tpu.pipeline_mode<synchronous>, transform_indices = @transform_4, window_bounds = array<i64: 1, 128>}, {pipeline_mode = #tpu.pipeline_mode<synchronous>, transform_indices = @transform_5, window_bounds = array<i64: 1, 128>}, {pipeline_mode = #tpu.pipeline_mode<synchronous>, transform_indices = @transform_6, window_bounds = array<i64: 1, 128>}, {transform_indices = @transform_7, window_bounds = array<i64: 1, 1>}, {transform_indices = @transform_8, window_bounds = array<i64: 8, 128>}]} {
    %c0 = arith.constant 0 : index
    %c0_0 = arith.constant 0 : index
    %0 = vector.load %arg1[%c0, %c0_0] : memref<8x32xf32, #tpu.memory_space<vmem>>, vector<8x32xf32>
    %c0_1 = arith.constant 0 : index
    %c0_2 = arith.constant 0 : index
    %1 = vector.load %arg2[%c0_1, %c0_2] : memref<32x128xf32, #tpu.memory_space<vmem>>, vector<32x128xf32>
    %cst = arith.constant dense<0.000000e+00> : vector<8x128xf32>
    %2 = tpu.matmul %0, %1, %cst {dimension_numbers = #tpu.dot_dimension_numbers<[1], [0], [0], [1], [0, 0, 1, 1], [], []>} : vector<8x32xf32>, vector<32x128xf32>, vector<8x128xf32> -> vector<8x128xf32>
    %c0_3 = arith.constant 0 : index
    %c0_4 = arith.constant 0 : index
    %3 = vector.load %arg3[%c0_3, %c0_4] : memref<1x128xf32, #tpu.memory_space<vmem>>, vector<1x128xf32>
    %4 = vector.broadcast %3 : vector<1x128xf32> to vector<8x128xf32>
    %5 = arith.addf %2, %4 : vector<8x128xf32>
    %6 = math.tanh %5 : vector<8x128xf32>
    %c0_5 = arith.constant 0 : index
    %c0_6 = arith.constant 0 : index
    %7 = vector.load %arg4[%c0_5, %c0_6] : memref<128x128xf32, #tpu.memory_space<vmem>>, vector<128x128xf32>
    %cst_7 = arith.constant dense<0.000000e+00> : vector<8x128xf32>
    %8 = tpu.matmul %6, %7, %cst_7 {dimension_numbers = #tpu.dot_dimension_numbers<[1], [0], [0], [1], [0, 0, 1, 1], [], []>} : vector<8x128xf32>, vector<128x128xf32>, vector<8x128xf32> -> vector<8x128xf32>
    %c0_8 = arith.constant 0 : index
    %c0_9 = arith.constant 0 : index
    %9 = vector.load %arg5[%c0_8, %c0_9] : memref<1x128xf32, #tpu.memory_space<vmem>>, vector<1x128xf32>
    %10 = vector.broadcast %9 : vector<1x128xf32> to vector<8x128xf32>
    %11 = arith.addf %8, %10 : vector<8x128xf32>
    %12 = math.tanh %11 : vector<8x128xf32>
    %c0_10 = arith.constant 0 : index
    %c0_11 = arith.constant 0 : index
    %13 = vector.load %arg6[%c0_10, %c0_11] : memref<1x128xf32, #tpu.memory_space<vmem>>, vector<1x128xf32>
    %14 = vector.broadcast %13 : vector<1x128xf32> to vector<8x128xf32>
    %15 = arith.mulf %12, %14 : vector<8x128xf32>
    %cst_12 = arith.constant dense<0.000000e+00> : vector<8xf32>
    %16 = vector.multi_reduction <add>, %15, %cst_12 [1] : vector<8x128xf32> to vector<8xf32>
    %17 = vector.shape_cast %16 : vector<8xf32> to vector<8x1xf32>
    %c0_13 = arith.constant 0 : index
    %c0_14 = arith.constant 0 : index
    %18 = memref.load %arg8[%c0_13, %c0_14] : memref<1x1xf32, #tpu.memory_space<smem>>
    %19 = vector.broadcast %18 : f32 to vector<8x1xf32>
    %20 = arith.addf %17, %19 : vector<8x1xf32>
    %c0_15 = arith.constant 0 : index
    %c0_16 = arith.constant 0 : index
    %21 = vector.load %arg7[%c0_15, %c0_16] : memref<1x128xf32, #tpu.memory_space<vmem>>, vector<1x128xf32>
    %cst_17 = arith.constant 5.000000e-01 : f32
    %22 = vector.broadcast %cst_17 : f32 to vector<1x128xf32>
    %23 = arith.cmpf ogt, %21, %22 : vector<1x128xf32>
    %24 = vector.shape_cast %23 : vector<1x128xi1> to vector<1x128xi1>
    %25 = vector.broadcast %24 : vector<1x128xi1> to vector<8x128xi1>
    %26 = vector.shape_cast %20 : vector<8x1xf32> to vector<8x1xf32>
    %27 = vector.broadcast %26 : vector<8x1xf32> to vector<8x128xf32>
    %28 = arith.select %25, %12, %27 : vector<8x128xi1>, vector<8x128xf32>
    %c0_18 = arith.constant 0 : index
    %c0_19 = arith.constant 0 : index
    %29 = vector.load %arg9[%c0_18, %c0_19] : memref<8x128xf32, #tpu.memory_space<vmem>>, vector<8x128xf32>
    tpu.vector_store %arg9[%c0_18, %c0_19], %28 {strides = array<i32>} : memref<8x128xf32, #tpu.memory_space<vmem>>, vector<8x128xf32>,
    return
  }
  func.func @transform_0(%arg0: i32) -> (i32, i32) {
    %c0_i32 = arith.constant 0 : i32
    %c0_i32_0 = arith.constant 0 : i32
    return %arg0, %c0_i32 : i32, i32
  }
  func.func @transform_1(%arg0: i32) -> (i32, i32) {
    %c0_i32 = arith.constant 0 : i32
    %c0_i32_0 = arith.constant 0 : i32
    %c0_i32_1 = arith.constant 0 : i32
    return %c0_i32, %c0_i32_0 : i32, i32
  }
  func.func @transform_2(%arg0: i32) -> (i32, i32) {
    %c0_i32 = arith.constant 0 : i32
    %c0_i32_0 = arith.constant 0 : i32
    %c0_i32_1 = arith.constant 0 : i32
    return %c0_i32, %c0_i32_0 : i32, i32
  }
  func.func @transform_3(%arg0: i32) -> (i32, i32) {
    %c0_i32 = arith.constant 0 : i32
    %c0_i32_0 = arith.constant 0 : i32
    %c0_i32_1 = arith.constant 0 : i32
    return %c0_i32, %c0_i32_0 : i32, i32
  }
  func.func @transform_4(%arg0: i32) -> (i32, i32) {
    %c0_i32 = arith.constant 0 : i32
    %c0_i32_0 = arith.constant 0 : i32
    %c0_i32_1 = arith.constant 0 : i32
    return %c0_i32, %c0_i32_0 : i32, i32
  }
  func.func @transform_5(%arg0: i32) -> (i32, i32) {
    %c0_i32 = arith.constant 0 : i32
    %c0_i32_0 = arith.constant 0 : i32
    %c0_i32_1 = arith.constant 0 : i32
    return %c0_i32, %c0_i32_0 : i32, i32
  }
  func.func @transform_6(%arg0: i32) -> (i32, i32) {
    %c0_i32 = arith.constant 0 : i32
    %c0_i32_0 = arith.constant 0 : i32
    %c0_i32_1 = arith.constant 0 : i32
    return %c0_i32, %c0_i32_0 : i32, i32
  }
  func.func @transform_7(%arg0: i32) -> (i32, i32) {
    %c0_i32 = arith.constant 0 : i32
    %c0_i32_0 = arith.constant 0 : i32
    %c0_i32_1 = arith.constant 0 : i32
    return %c0_i32, %c0_i32_0 : i32, i32
  }
  func.func @transform_8(%arg0: i32) -> (i32, i32) {
    %c0_i32 = arith.constant 0 : i32
    %c0_i32_0 = arith.constant 0 : i32
    return %arg0, %c0_i32 : i32, i32
  }
}

module attributes {stable_mosaic.version = 11 : i64} {
  func.func @_mlp_base_slab_kernel(%arg0: i32, %arg1: memref<8x32xf32, #tpu.memory_space<vmem>>, %arg2: memref<32x128xf32, #tpu.memory_space<vmem>>, %arg3: memref<1x128xf32, #tpu.memory_space<vmem>>, %arg4: memref<128x128xf32, #tpu.memory_space<vmem>>, %arg5: memref<1x128xf32, #tpu.memory_space<vmem>>, %arg6: memref<1x128xf32, #tpu.memory_space<vmem>>, %arg7: memref<1x128xf32, #tpu.memory_space<vmem>>, %arg8: memref<1x1xf32, #tpu.memory_space<smem>>, %arg9: memref<8x128xf32, #tpu.memory_space<vmem>>) attributes {dimension_semantics = [#tpu.dimension_semantics<parallel>], iteration_bounds = array<i64: 1>, scalar_prefetch = 0 : i64, scratch_operands = 0 : i64, tpu.core_type = #tpu.core_type<tc>, window_params = [{transform_indices = @transform_0, window_bounds = array<i64: 8, 32>}, {pipeline_mode = #tpu.pipeline_mode<synchronous>, transform_indices = @transform_1, window_bounds = array<i64: 32, 128>}, {pipeline_mode = #tpu.pipeline_mode<synchronous>, transform_indices = @transform_2, window_bounds = array<i64: 1, 128>}, {pipeline_mode = #tpu.pipeline_mode<synchronous>, transform_indices = @transform_3, window_bounds = array<i64: 128, 128>}, {pipeline_mode = #tpu.pipeline_mode<synchronous>, transform_indices = @transform_4, window_bounds = array<i64: 1, 128>}, {pipeline_mode = #tpu.pipeline_mode<synchronous>, transform_indices = @transform_5, window_bounds = array<i64: 1, 128>}, {pipeline_mode = #tpu.pipeline_mode<synchronous>, transform_indices = @transform_6, window_bounds = array<i64: 1, 128>}, {transform_indices = @transform_7, window_bounds = array<i64: 1, 1>}, {transform_indices = @transform_8, window_bounds = array<i64: 8, 128>}]} {
    %c0 = arith.constant 0 : index
    %c0_0 = arith.constant 0 : index
    %0 = vector.load %arg1[%c0, %c0_0] : memref<8x32xf32, #tpu.memory_space<vmem>>, vector<8x32xf32>
    %c0_1 = arith.constant 0 : index
    %c0_2 = arith.constant 0 : index
    %1 = vector.load %arg2[%c0_1, %c0_2] : memref<32x128xf32, #tpu.memory_space<vmem>>, vector<32x128xf32>
    %cst = arith.constant dense<0.000000e+00> : vector<8x128xf32>
    %2 = tpu.matmul %0, %1, %cst {dimension_numbers = #tpu.dot_dimension_numbers<[1], [0], [0], [1], [0, 0, 1, 1], [], []>} : vector<8x32xf32>, vector<32x128xf32>, vector<8x128xf32> -> vector<8x128xf32>
    %c0_3 = arith.constant 0 : index
    %c0_4 = arith.constant 0 : index
    %3 = vector.load %arg3[%c0_3, %c0_4] : memref<1x128xf32, #tpu.memory_space<vmem>>, vector<1x128xf32>
    %4 = vector.broadcast %3 : vector<1x128xf32> to vector<8x128xf32>
    %5 = arith.addf %2, %4 : vector<8x128xf32>
    %6 = math.tanh %5 : vector<8x128xf32>
    %c0_5 = arith.constant 0 : index
    %c0_6 = arith.constant 0 : index
    %7 = vector.load %arg4[%c0_5, %c0_6] : memref<128x128xf32, #tpu.memory_space<vmem>>, vector<128x128xf32>
    %cst_7 = arith.constant dense<0.000000e+00> : vector<8x128xf32>
    %8 = tpu.matmul %6, %7, %cst_7 {dimension_numbers = #tpu.dot_dimension_numbers<[1], [0], [0], [1], [0, 0, 1, 1], [], []>} : vector<8x128xf32>, vector<128x128xf32>, vector<8x128xf32> -> vector<8x128xf32>
    %c0_8 = arith.constant 0 : index
    %c0_9 = arith.constant 0 : index
    %9 = vector.load %arg5[%c0_8, %c0_9] : memref<1x128xf32, #tpu.memory_space<vmem>>, vector<1x128xf32>
    %10 = vector.broadcast %9 : vector<1x128xf32> to vector<8x128xf32>
    %11 = arith.addf %8, %10 : vector<8x128xf32>
    %12 = math.tanh %11 : vector<8x128xf32>
    %c0_10 = arith.constant 0 : index
    %c0_11 = arith.constant 0 : index
    %13 = vector.load %arg6[%c0_10, %c0_11] : memref<1x128xf32, #tpu.memory_space<vmem>>, vector<1x128xf32>
    %14 = vector.broadcast %13 : vector<1x128xf32> to vector<8x128xf32>
    %15 = arith.mulf %12, %14 : vector<8x128xf32>
    %cst_12 = arith.constant dense<0.000000e+00> : vector<8xf32>
    %16 = vector.multi_reduction <add>, %15, %cst_12 [1] : vector<8x128xf32> to vector<8xf32>
    %17 = vector.shape_cast %16 : vector<8xf32> to vector<8x1xf32>
    %c0_13 = arith.constant 0 : index
    %c0_14 = arith.constant 0 : index
    %18 = memref.load %arg8[%c0_13, %c0_14] : memref<1x1xf32, #tpu.memory_space<smem>>
    %19 = vector.broadcast %18 : f32 to vector<8x1xf32>
    %20 = arith.addf %17, %19 : vector<8x1xf32>
    %c0_15 = arith.constant 0 : index
    %c0_16 = arith.constant 0 : index
    %21 = vector.load %arg7[%c0_15, %c0_16] : memref<1x128xf32, #tpu.memory_space<vmem>>, vector<1x128xf32>
    %cst_17 = arith.constant 5.000000e-01 : f32
    %22 = vector.broadcast %cst_17 : f32 to vector<1x128xf32>
    %23 = arith.cmpf ogt, %21, %22 : vector<1x128xf32>
    %24 = vector.shape_cast %23 : vector<1x128xi1> to vector<1x128xi1>
    %25 = vector.broadcast %24 : vector<1x128xi1> to vector<8x128xi1>
    %26 = vector.shape_cast %20 : vector<8x1xf32> to vector<8x1xf32>
    %27 = vector.broadcast %26 : vector<8x1xf32> to vector<8x128xf32>
    %28 = arith.select %25, %12, %27 : vector<8x128xi1>, vector<8x128xf32>
    %c0_18 = arith.constant 0 : index
    %c0_19 = arith.constant 0 : index
    %29 = vector.load %arg9[%c0_18, %c0_19] : memref<8x128xf32, #tpu.memory_space<vmem>>, vector<8x128xf32>
    tpu.vector_store %arg9[%c0_18, %c0_19], %28 {strides = array<i32>} : memref<8x128xf32, #tpu.memory_space<vmem>>, vector<8x128xf32>,
    return
  }
  func.func @transform_0(%arg0: i32) -> (i32, i32) {
    %c0_i32 = arith.constant 0 : i32
    %c0_i32_0 = arith.constant 0 : i32
    return %arg0, %c0_i32 : i32, i32
  }
  func.func @transform_1(%arg0: i32) -> (i32, i32) {
    %c0_i32 = arith.constant 0 : i32
    %c0_i32_0 = arith.constant 0 : i32
    %c0_i32_1 = arith.constant 0 : i32
    return %c0_i32, %c0_i32_0 : i32, i32
  }
  func.func @transform_2(%arg0: i32) -> (i32, i32) {
    %c0_i32 = arith.constant 0 : i32
    %c0_i32_0 = arith.constant 0 : i32
    %c0_i32_1 = arith.constant 0 : i32
    return %c0_i32, %c0_i32_0 : i32, i32
  }
  func.func @transform_3(%arg0: i32) -> (i32, i32) {
    %c0_i32 = arith.constant 0 : i32
    %c0_i32_0 = arith.constant 0 : i32
    %c0_i32_1 = arith.constant 0 : i32
    return %c0_i32, %c0_i32_0 : i32, i32
  }
  func.func @transform_4(%arg0: i32) -> (i32, i32) {
    %c0_i32 = arith.constant 0 : i32
    %c0_i32_0 = arith.constant 0 : i32
    %c0_i32_1 = arith.constant 0 : i32
    return %c0_i32, %c0_i32_0 : i32, i32
  }
  func.func @transform_5(%arg0: i32) -> (i32, i32) {
    %c0_i32 = arith.constant 0 : i32
    %c0_i32_0 = arith.constant 0 : i32
    %c0_i32_1 = arith.constant 0 : i32
    return %c0_i32, %c0_i32_0 : i32, i32
  }
  func.func @transform_6(%arg0: i32) -> (i32, i32) {
    %c0_i32 = arith.constant 0 : i32
    %c0_i32_0 = arith.constant 0 : i32
    %c0_i32_1 = arith.constant 0 : i32
    return %c0_i32, %c0_i32_0 : i32, i32
  }
  func.func @transform_7(%arg0: i32) -> (i32, i32) {
    %c0_i32 = arith.constant 0 : i32
    %c0_i32_0 = arith.constant 0 : i32
    %c0_i32_1 = arith.constant 0 : i32
    return %c0_i32, %c0_i32_0 : i32, i32
  }
  func.func @transform_8(%arg0: i32) -> (i32, i32) {
    %c0_i32 = arith.constant 0 : i32
    %c0_i32_0 = arith.constant 0 : i32
    return %arg0, %c0_i32 : i32, i32
  }
}

</mosaic_0001>

<bundles_post_ra>
// kernel: tpu_custom_call.1
= control target key start
LH: loop header
LB: loop body
LE: loop exit
PB: predicated region body
PF: predicated region fallthrough
CT: control target
= control target key end

     0   :  { %14 = vsyncpa [#allocation4], 0  ;;  %s396_s0 = inlined_call_operand.hbm [shape: f32[4,32], index: 0, kind: input, shape index: {}]   ;;  %s397_s1 = inlined_call_operand.hbm [shape: f32[32,128], index: 1, kind: input, shape index: {}]   ;;  %s398_s2 = inlined_call_operand.vmem [shape: f32[1,128], index: 2, kind: input, shape index: {}]   ;;  %s399_s3 = inlined_call_operand.hbm [shape: f32[128,128], index: 3, kind: input, shape index: {}]   ;;  %s400_s4 = inlined_call_operand.vmem [shape: f32[1,128], index: 4, kind: input, shape index: {}]   ;;  %s401_s5 = inlined_call_operand.vmem [shape: f32[1,128], index: 5, kind: input, shape index: {}]   ;;  %s402_s6 = inlined_call_operand.vmem [shape: f32[1,128], index: 6, kind: input, shape index: {}]   ;;  %s403_s7 = inlined_call_operand.<no memory space> [shape: f32[1,1], index: 7, kind: input, shape index: {}]   ;;  %s404_s8 = inlined_call_operand.hbm [shape: f32[4,128], index: 8, kind: output, shape index: {}]  }
   0x1   :  { %15 = vsyncpa [#allocation7], 0 }
   0x2   :  { %16 = vsyncpa [#allocation5], 0  ;;  %s34_s29 = sshll.u32 %s397_s1, 4  ;;  %s35_s29 = int_to_ptr.hbm [resolvable:$true] %s34_s29 }
   0x3   :  { %20 = vsyncadd [#allocation4], 64  ;;  %s309_s30 = smov [#allocation6]   ;;  %s21_s12 = sshll.u32 %s396_s0, 4  ;;  %s22_s12 = int_to_ptr.hbm [resolvable:$true] %s21_s12 }
   0x4   :  { %s36_s9 = sshll.u32 %s309_s30, 4  ;;  %s310_s13 = smov 128   ;;  %s37_s9 = int_to_ptr.vmem [resolvable:$true] %s36_s9 }
   0x5   :  { %s311_s14 = smov 8   ;;  %s312_s15 = smov [#allocation3]  }
   0x6   :  { %42 = dma.hbm_to_vmem [thread:$0]  %s35_s29, 512, %s37_s9, [#allocation7], %s310_s13, %s310_s13, %s311_s14  }
   0x7   :  { %s23_s16 = sshll.u32 %s312_s15, 4  ;;  %s313_s17 = smov 64   ;;  %s24_s16 = int_to_ptr.vmem [resolvable:$true] %s23_s16 }
   0x8   :  { %s314_s18 = smov 4   ;;  %s49_s20 = sshll.u32 %s399_s3, 4  ;;  %s50_s20 = int_to_ptr.hbm [resolvable:$true] %s49_s20 }
   0x9   :  { %29 = dma.hbm_to_vmem [thread:$0]  %s22_s12, 64, %s24_s16, [#allocation4], %s313_s17, %s313_s17, %s314_s18  }
   0xa   :  { %s315_s21 = smov [#allocation8]  }
   0xb   :  { %s51_s0 = sshll.u32 %s315_s21, 4  ;;  %s52_s0 = int_to_ptr.vmem [resolvable:$true] %s51_s0 }
   0xc   :  { %57 = dma.hbm_to_vmem [thread:$0]  %s50_s20, 2048, %s52_s0, [#allocation7], %s310_s13, %s310_s13, %s311_s14  }
   0xd   :  { %303 = dma.done.wait [#allocation4], 128  }
   0xe   :  { %304 = vsyncadd [#allocation4], 4294967168 }
   0xf   :  { %305 = dma.done.wait [#allocation7], 2560  }
  0x10   :  { %306 = vsyncadd [#allocation7], 4294964736  ;;  %v82_v0 = vld [vmem:[#allocation6 + $0x18] sm:$0xff]  ;;  %v81_v1 = vld [vmem:[#allocation6 + $0x10] sm:$0xff]  ;;  %vm87_vm0 = vcmask 261120   ;;  %v316_v32 = vmov 0   ;;  %v161_v35 = vstv %s403_s7 }
  0x11   :  { %103 = vmatpush.msra.mxu0 %v82_v0  ;;  %v127_v2 = vld [vmem:[#allocation8 + $0x78] sm:$0xff]  ;;  %v80_v3 = vld [vmem:[#allocation6 + $0x8] sm:$0xff]  ;;  %v126_v4 = vld [vmem:[#allocation8 + $0x70] sm:$0xff] }
  0x12   :  { %132 = vmatpush.msra.mxu1 %v127_v2  ;;  %v125_v5 = vld [vmem:[#allocation8 + $0x68] sm:$0xff]  ;;  %v79_v6 = vld [vmem:[#allocation6] sm:$0xff]  ;;  %v78_v7 = vld [vmem:[#allocation3] sm:$0xff] }
  0x13   :  { %104 = vmatpush.msra.mxu0 %v81_v1  ;;  %v124_v8 = vld [vmem:[#allocation8 + $0x60] sm:$0xff]  ;;  %v123_v9 = vld [vmem:[#allocation8 + $0x58] sm:$0xff]  ;;  %v122_v10 = vld [vmem:[#allocation8 + $0x50] sm:$0xff] }
  0x14   :  { %133 = vmatpush.msra.mxu1 %v126_v4  ;;  %v121_v11 = vld [vmem:[#allocation8 + $0x48] sm:$0xff]  ;;  %v120_v12 = vld [vmem:[#allocation8 + $0x40] sm:$0xff]  ;;  %v119_v13 = vld [vmem:[#allocation8 + $0x38] sm:$0xff] }
  0x15   :  { %105 = vmatpush.msra.mxu0 %v80_v3  ;;  %v118_v14 = vld [vmem:[#allocation8 + $0x30] sm:$0xff]  ;;  %v117_v15 = vld [vmem:[#allocation8 + $0x28] sm:$0xff]  ;;  %v116_v16 = vld [vmem:[#allocation8 + $0x20] sm:$0xff] }
  0x16   :  { %134 = vmatpush.msra.mxu1 %v125_v5  ;;  %v115_v17 = vld [vmem:[#allocation8 + $0x18] sm:$0xff]  ;;  %v114_v18 = vld [vmem:[#allocation8 + $0x10] sm:$0xff]  ;;  %v113_v19 = vld [vmem:[#allocation8 + $0x8] sm:$0xff] }
  0x17   :  { %106 = vmatpush.msra.mxu0 %v79_v6  ;;  %v112_v20 = vld [vmem:[#allocation8] sm:$0xff]  ;;  %v200_v21 = vld [vmem:[%s398_s2] ss:$0 sm:$0xff] }
  0x18   :  { %190 = vmatmul.msk.f32.vlgmr.msra.gmra.mxu0 %vm87_vm0, %v78_v7  ;;  %135 = vmatpush.msra.mxu1 %v124_v8  ;;  %v201_v25 = vld [vmem:[%s400_s4] ss:$0 sm:$0xff] }
  0x19   :  { %v202_v28 = vld [vmem:[%s401_s5] ss:$0 sm:$0xff] }
  0x1a   :  { %136 = vmatpush.msra.mxu1 %v123_v9  ;;  %v163_v31 = vld [vmem:[%s402_s6] sm:$0x1] }
  0x1b   :  { %vm164_vm1 = vcmp.gt.f32.partialorder %v163_v31, 0.5 }
  0x1c   :  { %137 = vmatpush.msra.mxu1 %v122_v10  ;;  %v165_v33 = vsel %vm164_vm1, 1, %v316_v32 }
  0x1d   :  { %v166_v34 = vperm.slane %v165_v33, 0 }
  0x1e   :  { %138 = vmatpush.msra.mxu1 %v121_v11 }
  0x1f   :  { %vm167_vm2 = vcmp.eq.s32.totalorder %v166_v34, 1 }
  0x20   :  { %139 = vmatpush.msra.mxu1 %v120_v12 }
  0x22   :  { %140 = vmatpush.msra.mxu1 %v119_v13 }
  0x24   :  { %141 = vmatpush.msra.mxu1 %v118_v14 }
  0x26   :  { %142 = vmatpush.msra.mxu1 %v117_v15 }
  0x28   :  { %143 = vmatpush.msra.mxu1 %v116_v16 }
  0x2a   :  { %144 = vmatpush.msra.mxu1 %v115_v17 }
  0x2c   :  { %145 = vmatpush.msra.mxu1 %v114_v18 }
  0x2e   :  { %146 = vmatpush.msra.mxu1 %v113_v19 }
  0x30   :  { %147 = vmatpush.msra.mxu1 %v112_v20 }
  0x95   :  { %v108_v22 = vpop.f32.mrf.mxu0 }
  0x96   :  { %v109_v23 = vadd.f32 %v200_v21, %v108_v22 }
  0x98   :  { %203 = vtanh.f32 %v109_v23 }
  0x9e   :  { %v204_v24 = vpop.eup %203 }
  0x9f   :  { %148 = vmatmul.f32.vlgmr.msra.gmra.mxu1 %v204_v24 }
 0x11c   :  { %v149_v26 = vpop.f32.mrf.mxu1 }
 0x11d   :  { %v150_v27 = vadd.f32 %v201_v25, %v149_v26 }
 0x11f   :  { %205 = vtanh.f32 %v150_v27 }
 0x125   :  { %v206_v29 = vpop.eup %205 }
 0x126   :  { %v157_v30 = vmul.f32 %v206_v29, %v202_v28 }
 0x128   :  { %158 = vadd.xlane.f32.xlu0 %v157_v30 }
 0x19b   :  { %v159_v36 = vpop.xlane.xlu0 %158 }
 0x19c   :  { %v162_v37 = vadd.f32 %v161_v35, %v159_v36 }
 0x19e   :  { %v168_v38 = vsel %vm167_vm2, %v206_v29, %v162_v37 }
 0x19f   :  { %169 = vst [vmem:[#allocation9] sm:$0xff] %v168_v38 }
 0x1a0   :  { %173 = vsyncadd [#allocation5], 64  ;;  %s176_s30 = sshll.u32 %s404_s8, 4  ;;  %s317_s9 = smov [#allocation9]   ;;  %s177_s30 = int_to_ptr.hbm [resolvable:$true] %s176_s30 }
 0x1a1   :  { %s174_s6 = sshll.u32 %s317_s9, 4  ;;  %s175_s6 = int_to_ptr.vmem [resolvable:$true] %s174_s6 }
 0x1a2   :  { %182 = dma.vmem_to_hbm [thread:$0]  %s175_s6, 64, %s177_s30, [#allocation5], %s313_s17, %s313_s17, %s314_s18  }
 0x1a3   :  { %307 = dma.done.wait [#allocation5], 128  }
 0x1a4   :  { %308 = vsyncadd [#allocation5], 4294967168 }
 0x1a5   :  { %187 = vsyncpa [#allocation4], 1 }
 0x1a6   :  { %188 = vsyncpa [#allocation7], 1 }
 0x1a7   :  { %189 = vsyncpa [#allocation5], 1 }

// kernel: tpu_custom_call.1
= control target key start
LH: loop header
LB: loop body
LE: loop exit
PB: predicated region body
PF: predicated region fallthrough
CT: control target
= control target key end

     0   :  { %14 = vsyncpa [#allocation4], 0  ;;  %s396_s0 = inlined_call_operand.hbm [shape: f32[4,32], index: 0, kind: input, shape index: {}]   ;;  %s397_s1 = inlined_call_operand.hbm [shape: f32[32,128], index: 1, kind: input, shape index: {}]   ;;  %s398_s2 = inlined_call_operand.vmem [shape: f32[1,128], index: 2, kind: input, shape index: {}]   ;;  %s399_s3 = inlined_call_operand.hbm [shape: f32[128,128], index: 3, kind: input, shape index: {}]   ;;  %s400_s4 = inlined_call_operand.vmem [shape: f32[1,128], index: 4, kind: input, shape index: {}]   ;;  %s401_s5 = inlined_call_operand.vmem [shape: f32[1,128], index: 5, kind: input, shape index: {}]   ;;  %s402_s6 = inlined_call_operand.vmem [shape: f32[1,128], index: 6, kind: input, shape index: {}]   ;;  %s403_s7 = inlined_call_operand.<no memory space> [shape: f32[1,1], index: 7, kind: input, shape index: {}]   ;;  %s404_s8 = inlined_call_operand.hbm [shape: f32[4,128], index: 8, kind: output, shape index: {}]  }
   0x1   :  { %15 = vsyncpa [#allocation7], 0 }
   0x2   :  { %16 = vsyncpa [#allocation5], 0  ;;  %s34_s29 = sshll.u32 %s397_s1, 4  ;;  %s35_s29 = int_to_ptr.hbm [resolvable:$true] %s34_s29 }
   0x3   :  { %20 = vsyncadd [#allocation4], 64  ;;  %s309_s30 = smov [#allocation6]   ;;  %s21_s12 = sshll.u32 %s396_s0, 4  ;;  %s22_s12 = int_to_ptr.hbm [resolvable:$true] %s21_s12 }
   0x4   :  { %s36_s9 = sshll.u32 %s309_s30, 4  ;;  %s310_s13 = smov 128   ;;  %s37_s9 = int_to_ptr.vmem [resolvable:$true] %s36_s9 }
   0x5   :  { %s311_s14 = smov 8   ;;  %s312_s15 = smov [#allocation3]  }
   0x6   :  { %42 = dma.hbm_to_vmem [thread:$0]  %s35_s29, 512, %s37_s9, [#allocation7], %s310_s13, %s310_s13, %s311_s14  }
   0x7   :  { %s23_s16 = sshll.u32 %s312_s15, 4  ;;  %s313_s17 = smov 64   ;;  %s24_s16 = int_to_ptr.vmem [resolvable:$true] %s23_s16 }
   0x8   :  { %s314_s18 = smov 4   ;;  %s49_s20 = sshll.u32 %s399_s3, 4  ;;  %s50_s20 = int_to_ptr.hbm [resolvable:$true] %s49_s20 }
   0x9   :  { %29 = dma.hbm_to_vmem [thread:$0]  %s22_s12, 64, %s24_s16, [#allocation4], %s313_s17, %s313_s17, %s314_s18  }
   0xa   :  { %s315_s21 = smov [#allocation8]  }
   0xb   :  { %s51_s0 = sshll.u32 %s315_s21, 4  ;;  %s52_s0 = int_to_ptr.vmem [resolvable:$true] %s51_s0 }
   0xc   :  { %57 = dma.hbm_to_vmem [thread:$0]  %s50_s20, 2048, %s52_s0, [#allocation7], %s310_s13, %s310_s13, %s311_s14  }
   0xd   :  { %303 = dma.done.wait [#allocation4], 128  }
   0xe   :  { %304 = vsyncadd [#allocation4], 4294967168 }
   0xf   :  { %305 = dma.done.wait [#allocation7], 2560  }
  0x10   :  { %306 = vsyncadd [#allocation7], 4294964736  ;;  %v82_v0 = vld [vmem:[#allocation6 + $0x18] sm:$0xff]  ;;  %v81_v1 = vld [vmem:[#allocation6 + $0x10] sm:$0xff]  ;;  %vm87_vm0 = vcmask 261120   ;;  %v316_v32 = vmov 0   ;;  %v161_v35 = vstv %s403_s7 }
  0x11   :  { %103 = vmatpush.msra.mxu0 %v82_v0  ;;  %v127_v2 = vld [vmem:[#allocation8 + $0x78] sm:$0xff]  ;;  %v80_v3 = vld [vmem:[#allocation6 + $0x8] sm:$0xff]  ;;  %v126_v4 = vld [vmem:[#allocation8 + $0x70] sm:$0xff] }
  0x12   :  { %132 = vmatpush.msra.mxu1 %v127_v2  ;;  %v125_v5 = vld [vmem:[#allocation8 + $0x68] sm:$0xff]  ;;  %v79_v6 = vld [vmem:[#allocation6] sm:$0xff]  ;;  %v78_v7 = vld [vmem:[#allocation3] sm:$0xff] }
  0x13   :  { %104 = vmatpush.msra.mxu0 %v81_v1  ;;  %v124_v8 = vld [vmem:[#allocation8 + $0x60] sm:$0xff]  ;;  %v123_v9 = vld [vmem:[#allocation8 + $0x58] sm:$0xff]  ;;  %v122_v10 = vld [vmem:[#allocation8 + $0x50] sm:$0xff] }
  0x14   :  { %133 = vmatpush.msra.mxu1 %v126_v4  ;;  %v121_v11 = vld [vmem:[#allocation8 + $0x48] sm:$0xff]  ;;  %v120_v12 = vld [vmem:[#allocation8 + $0x40] sm:$0xff]  ;;  %v119_v13 = vld [vmem:[#allocation8 + $0x38] sm:$0xff] }
  0x15   :  { %105 = vmatpush.msra.mxu0 %v80_v3  ;;  %v118_v14 = vld [vmem:[#allocation8 + $0x30] sm:$0xff]  ;;  %v117_v15 = vld [vmem:[#allocation8 + $0x28] sm:$0xff]  ;;  %v116_v16 = vld [vmem:[#allocation8 + $0x20] sm:$0xff] }
  0x16   :  { %134 = vmatpush.msra.mxu1 %v125_v5  ;;  %v115_v17 = vld [vmem:[#allocation8 + $0x18] sm:$0xff]  ;;  %v114_v18 = vld [vmem:[#allocation8 + $0x10] sm:$0xff]  ;;  %v113_v19 = vld [vmem:[#allocation8 + $0x8] sm:$0xff] }
  0x17   :  { %106 = vmatpush.msra.mxu0 %v79_v6  ;;  %v112_v20 = vld [vmem:[#allocation8] sm:$0xff]  ;;  %v200_v21 = vld [vmem:[%s398_s2] ss:$0 sm:$0xff] }
  0x18   :  { %190 = vmatmul.msk.f32.vlgmr.msra.gmra.mxu0 %vm87_vm0, %v78_v7  ;;  %135 = vmatpush.msra.mxu1 %v124_v8  ;;  %v201_v25 = vld [vmem:[%s400_s4] ss:$0 sm:$0xff] }
  0x19   :  { %v202_v28 = vld [vmem:[%s401_s5] ss:$0 sm:$0xff] }
  0x1a   :  { %136 = vmatpush.msra.mxu1 %v123_v9  ;;  %v163_v31 = vld [vmem:[%s402_s6] sm:$0x1] }
  0x1b   :  { %vm164_vm1 = vcmp.gt.f32.partialorder %v163_v31, 0.5 }
  0x1c   :  { %137 = vmatpush.msra.mxu1 %v122_v10  ;;  %v165_v33 = vsel %vm164_vm1, 1, %v316_v32 }
  0x1d   :  { %v166_v34 = vperm.slane %v165_v33, 0 }
  0x1e   :  { %138 = vmatpush.msra.mxu1 %v121_v11 }
  0x1f   :  { %vm167_vm2 = vcmp.eq.s32.totalorder %v166_v34, 1 }
  0x20   :  { %139 = vmatpush.msra.mxu1 %v120_v12 }
  0x22   :  { %140 = vmatpush.msra.mxu1 %v119_v13 }
  0x24   :  { %141 = vmatpush.msra.mxu1 %v118_v14 }
  0x26   :  { %142 = vmatpush.msra.mxu1 %v117_v15 }
  0x28   :  { %143 = vmatpush.msra.mxu1 %v116_v16 }
  0x2a   :  { %144 = vmatpush.msra.mxu1 %v115_v17 }
  0x2c   :  { %145 = vmatpush.msra.mxu1 %v114_v18 }
  0x2e   :  { %146 = vmatpush.msra.mxu1 %v113_v19 }
  0x30   :  { %147 = vmatpush.msra.mxu1 %v112_v20 }
  0x95   :  { %v108_v22 = vpop.f32.mrf.mxu0 }
  0x96   :  { %v109_v23 = vadd.f32 %v200_v21, %v108_v22 }
  0x98   :  { %203 = vtanh.f32 %v109_v23 }
  0x9e   :  { %v204_v24 = vpop.eup %203 }
  0x9f   :  { %148 = vmatmul.f32.vlgmr.msra.gmra.mxu1 %v204_v24 }
 0x11c   :  { %v149_v26 = vpop.f32.mrf.mxu1 }
 0x11d   :  { %v150_v27 = vadd.f32 %v201_v25, %v149_v26 }
 0x11f   :  { %205 = vtanh.f32 %v150_v27 }
 0x125   :  { %v206_v29 = vpop.eup %205 }
 0x126   :  { %v157_v30 = vmul.f32 %v206_v29, %v202_v28 }
 0x128   :  { %158 = vadd.xlane.f32.xlu0 %v157_v30 }
 0x19b   :  { %v159_v36 = vpop.xlane.xlu0 %158 }
 0x19c   :  { %v162_v37 = vadd.f32 %v161_v35, %v159_v36 }
 0x19e   :  { %v168_v38 = vsel %vm167_vm2, %v206_v29, %v162_v37 }
 0x19f   :  { %169 = vst [vmem:[#allocation9] sm:$0xff] %v168_v38 }
 0x1a0   :  { %173 = vsyncadd [#allocation5], 64  ;;  %s176_s30 = sshll.u32 %s404_s8, 4  ;;  %s317_s9 = smov [#allocation9]   ;;  %s177_s30 = int_to_ptr.hbm [resolvable:$true] %s176_s30 }
 0x1a1   :  { %s174_s6 = sshll.u32 %s317_s9, 4  ;;  %s175_s6 = int_to_ptr.vmem [resolvable:$true] %s174_s6 }
 0x1a2   :  { %182 = dma.vmem_to_hbm [thread:$0]  %s175_s6, 64, %s177_s30, [#allocation5], %s313_s17, %s313_s17, %s314_s18  }
 0x1a3   :  { %307 = dma.done.wait [#allocation5], 128  }
 0x1a4   :  { %308 = vsyncadd [#allocation5], 4294967168 }
 0x1a5   :  { %187 = vsyncpa [#allocation4], 1 }
 0x1a6   :  { %188 = vsyncpa [#allocation7], 1 }
 0x1a7   :  { %189 = vsyncpa [#allocation5], 1 }

</bundles_post_ra>
